<compile_context>
chip_gen: v7x
topology: tpu7x:2x2x1
jax: 0.10.0
libtpu: 0.0.40
codegen_flags: <defaults>
</compile_context>

<pallas_src>
import functools

import jax
import jax.numpy as jnp
from jax.experimental import pallas as pl
from jax.experimental.pallas import tpu as pltpu

LOG_STD_MIN = -20.0
LOG_STD_MAX = 2.0


def _round_up(x, m):
    return ((x + m - 1) // m) * m


def _policy_kernel(x_ref, w1_ref, b1_ref, w2_ref, b2_ref, wh_ref, bh_ref,
                   out_ref, *, action_size):
    # x_ref: [TB, S] bf16 ; w*_ref: bf16 ; b*_ref: f32 ; out_ref: [TB, PAD]
    # fc1 + ReLU (bf16 MXU operands, f32 accumulation, f32 vector math)
    h1 = jnp.dot(x_ref[...], w1_ref[...],
                 preferred_element_type=jnp.float32) + b1_ref[...]
    h1 = jnp.maximum(h1, 0.0)

    # fc2 + ReLU
    h2 = jnp.dot(h1.astype(jnp.bfloat16), w2_ref[...],
                 preferred_element_type=jnp.float32) + b2_ref[...]
    h2 = jnp.maximum(h2, 0.0)

    # fused heads: columns [0, A) = mean, [A, 2A) = log_std, rest = padding
    heads = jnp.dot(h2.astype(jnp.bfloat16), wh_ref[...],
                    preferred_element_type=jnp.float32) + bh_ref[...]

    col = jax.lax.broadcasted_iota(jnp.int32, heads.shape, 1)
    is_logstd = (col >= action_size) & (col < 2 * action_size)
    heads = jnp.where(is_logstd,
                      jnp.clip(heads, LOG_STD_MIN, LOG_STD_MAX),
                      heads)

    out_ref[...] = heads.astype(out_ref.dtype)  # single lane-dense store


def pack_params(params):
    """One-time kernel-ready weight prep. Call once, reuse across forward calls.

    Casts w1/w2 to bf16, fuses [wm | ws] into one lane-dense (>=128-wide)
    head weight/bias, and records action_size / padded head width. Doing this
    per forward() call costs several XLA ops + HBM round trips comparable to
    the kernel itself at small batch.
    """
    A = params["wm"].shape[1]
    PAD = max(128, _round_up(2 * A, 128))
    w_heads = jnp.pad(jnp.concatenate([params["wm"], params["ws"]], axis=1),
                      ((0, 0), (0, PAD - 2 * A)))
    b_heads = jnp.pad(jnp.concatenate([params["bm"], params["bs"]], axis=1),
                      ((0, 0), (0, PAD - 2 * A)))
    return dict(
        w1=params["w1"].astype(jnp.bfloat16),
        b1=params["b1"].astype(jnp.float32),
        w2=params["w2"].astype(jnp.bfloat16),
        b2=params["b2"].astype(jnp.float32),
        wh=w_heads.astype(jnp.bfloat16),
        bh=b_heads.astype(jnp.float32),
        action_size=A,    # python int (static)
        head_pad=PAD,     # python int (static)
    )


def _choose_batch_tiling(B, block_b):
    """Pick (TB, B_pad, n_tiles) for the 1-D batch grid.

    - tile <= block_b and a multiple of 16 (bf16 sublane packing),
    - >= 2 tiles whenever B >= 32 so v7x's second TensorCore gets work,
    - tail padding bounded by < 16 rows per tile (not TB - 1).
    """
    min_tiles = 2 if B >= 32 else 1
    n_tiles = max(pl.cdiv(B, block_b), min_tiles)
    TB = _round_up(pl.cdiv(B, n_tiles), 16)
    B_pad = n_tiles * TB
    return TB, B_pad, n_tiles


def policy_network_forward(state, packed, *, block_b=1024,
                           out_dtype=jnp.float32, return_packed=False):
    """state: [B, state_size] f32. packed: output of pack_params().

    Returns (mean, log_std), each [B, action_size], unless return_packed=True
    in which case the raw lane-dense slab [B_pad, PAD] is returned
    (cols [0,A)=mean, [A,2A)=log_std) for downstream fused consumption.
    """
    B, S = state.shape
    A = packed["action_size"]
    PAD = packed["head_pad"]
    w1, b1 = packed["w1"], packed["b1"]
    w2, b2 = packed["w2"], packed["b2"]
    wh, bh = packed["wh"], packed["bh"]
    fc1 = w1.shape[1]
    fc2 = w2.shape[1]

    TB, B_pad, n_tiles = _choose_batch_tiling(B, block_b)
    x = state.astype(jnp.bfloat16)
    if B_pad != B:
        x = jnp.pad(x, ((0, B_pad - B), (0, 0)))

    kernel = functools.partial(_policy_kernel, action_size=A)

    out_bytes = jnp.dtype(out_dtype).itemsize
    cost = pl.CostEstimate(
        flops=2 * B_pad * (S * fc1 + fc1 * fc2 + fc2 * PAD),
        transcendentals=0,
        bytes_accessed=(B_pad * S * 2                              # state (bf16)
                        + (S * fc1 + fc1 * fc2 + fc2 * PAD) * 2    # weights (bf16)
                        + (fc1 + fc2 + PAD) * 4                    # biases (f32)
                        + B_pad * PAD * out_bytes),                # output
    )

    const = lambda i: (0, 0)   # weights/biases: same block every step (VMEM-resident)
    out = pl.pallas_call(
        kernel,
        out_shape=jax.ShapeDtypeStruct((B_pad, PAD), out_dtype),
        grid_spec=pltpu.PrefetchScalarGridSpec(
            num_scalar_prefetch=0,
            grid=(n_tiles,),
            in_specs=[
                pl.BlockSpec((TB, S), lambda i: (i, 0)),   # state tile (pipelined)
                pl.BlockSpec((S, fc1), const),             # w1
                pl.BlockSpec((1, fc1), const),             # b1
                pl.BlockSpec((fc1, fc2), const),           # w2
                pl.BlockSpec((1, fc2), const),             # b2
                pl.BlockSpec((fc2, PAD), const),           # fused head weights
                pl.BlockSpec((1, PAD), const),             # fused head bias
            ],
            out_specs=pl.BlockSpec((TB, PAD), lambda i: (i, 0)),
        ),
        compiler_params=pltpu.CompilerParams(
            dimension_semantics=("parallel",),   # shards batch tiles across TCs on v7x
        ),
        cost_estimate=cost,
    )(x, w1, b1, w2, b2, wh, bh)

    if return_packed:
        return out
    mean = out[:B, :A]
    log_std = out[:B, A:2 * A]
    return mean, log_std


def init_params(key, state_size, action_size, fc1_units=128, fc2_units=128, init_w=0.003):
    """Deterministic synthetic init mirroring the PyTorch module's shapes.
    Linear defaults: U(-1/sqrt(fan_in), 1/sqrt(fan_in)); heads: U(-init_w, init_w).
    Weights are stored [in, out] (transposed vs. torch's [out, in])."""
    ks = jax.random.split(key, 8)

    def lin(kw, kb, fan_in, fan_out):
        bound = 1.0 / jnp.sqrt(fan_in)
        w = jax.random.uniform(kw, (fan_in, fan_out), jnp.float32, -bound, bound)
        b = jax.random.uniform(kb, (1, fan_out), jnp.float32, -bound, bound)
        return w, b

    w1, b1 = lin(ks[0], ks[1], state_size, fc1_units)
    w2, b2 = lin(ks[2], ks[3], fc1_units, fc2_units)
    wm = jax.random.uniform(ks[4], (fc2_units, action_size), jnp.float32, -init_w, init_w)
    bm = jax.random.uniform(ks[5], (1, action_size), jnp.float32, -init_w, init_w)
    ws = jax.random.uniform(ks[6], (fc2_units, action_size), jnp.float32, -init_w, init_w)
    bs = jax.random.uniform(ks[7], (1, action_size), jnp.float32, -init_w, init_w)
    return dict(w1=w1, b1=b1, w2=w2, b2=b2, wm=wm, bm=bm, ws=ws, bs=bs)


def _reference_bf16(state, p):
    """Same math as the kernel (bf16 MXU operands, f32 accumulation/elementwise)."""
    bf, f32 = jnp.bfloat16, jnp.float32
    x = state.astype(bf)
    h1 = jnp.maximum(jnp.dot(x, p["w1"].astype(bf), preferred_element_type=f32) + p["b1"], 0.0)
    h2 = jnp.maximum(jnp.dot(h1.astype(bf), p["w2"].astype(bf), preferred_element_type=f32) + p["b2"], 0.0)
    mean = jnp.dot(h2.astype(bf), p["wm"].astype(bf), preferred_element_type=f32) + p["bm"]
    log_std = jnp.clip(
        jnp.dot(h2.astype(bf), p["ws"].astype(bf), preferred_element_type=f32) + p["bs"],
        LOG_STD_MIN, LOG_STD_MAX)
    return mean, log_std


def _reference_f32(state, p):
    h1 = jnp.maximum(state @ p["w1"] + p["b1"], 0.0)
    h2 = jnp.maximum(h1 @ p["w2"] + p["b2"], 0.0)
    mean = h2 @ p["wm"] + p["bm"]
    log_std = jnp.clip(h2 @ p["ws"] + p["bs"], LOG_STD_MIN, LOG_STD_MAX)
    return mean, log_std


if __name__ == "__main__":
    key = jax.random.PRNGKey(0)
    k_param, k_state = jax.random.split(key)

    B, state_size, action_size = 8, 16, 4
    params = init_params(k_param, state_size, action_size, fc1_units=128, fc2_units=128)
    packed = pack_params(params)   # one-time weight prep, reused below
    state = jax.random.normal(k_state, (B, state_size), jnp.float32)

    # --- small batch (single 16-row tile) ---
    mean, log_std = policy_network_forward(state, packed)
    jax.block_until_ready((mean, log_std))

    ref_mean, ref_log_std = _reference_bf16(state, params)
    assert jnp.allclose(mean, ref_mean, atol=1e-3, rtol=1e-3)
    assert jnp.allclose(log_std, ref_log_std, atol=1e-3, rtol=1e-3)

    f32_mean, f32_log_std = _reference_f32(state, params)
    assert jnp.allclose(mean, f32_mean, atol=3e-2, rtol=3e-2)
    assert jnp.allclose(log_std, f32_log_std, atol=3e-2, rtol=3e-2)
    assert mean.shape == (B, action_size) and log_std.shape == (B, action_size)

    # --- odd batch (exercises >=2 tiles + bounded tail padding) ---
    B2 = 300
    state2 = jax.random.normal(jax.random.PRNGKey(1), (B2, state_size), jnp.float32)
    mean2, log_std2 = policy_network_forward(state2, packed)
    jax.block_until_ready((mean2, log_std2))

    ref_mean2, ref_log_std2 = _reference_bf16(state2, params)
    assert mean2.shape == (B2, action_size) and log_std2.shape == (B2, action_size)
    assert jnp.allclose(mean2, ref_mean2, atol=1e-3, rtol=1e-3)
    assert jnp.allclose(log_std2, ref_log_std2, atol=1e-3, rtol=1e-3)

    print("KERNEL_OK")
</pallas_src>

<mosaic_0001>
module attributes {stable_mosaic.version = 11 : i64} {
  func.func @_policy_kernel(%arg0: i32, %arg1: memref<16x16xbf16, #tpu.memory_space<vmem>>, %arg2: memref<16x128xbf16, #tpu.memory_space<vmem>>, %arg3: memref<1x128xf32, #tpu.memory_space<vmem>>, %arg4: memref<128x128xbf16, #tpu.memory_space<vmem>>, %arg5: memref<1x128xf32, #tpu.memory_space<vmem>>, %arg6: memref<128x128xbf16, #tpu.memory_space<vmem>>, %arg7: memref<1x128xf32, #tpu.memory_space<vmem>>, %arg8: memref<16x128xf32, #tpu.memory_space<vmem>>) attributes {dimension_semantics = [#tpu.dimension_semantics<parallel>], iteration_bounds = array<i64: 1>, scalar_prefetch = 0 : i64, scratch_operands = 0 : i64, tpu.core_type = #tpu.core_type<tc>, window_params = [{transform_indices = @transform_0, window_bounds = array<i64: 16, 16>}, {pipeline_mode = #tpu.pipeline_mode<synchronous>, transform_indices = @transform_1, window_bounds = array<i64: 16, 128>}, {pipeline_mode = #tpu.pipeline_mode<synchronous>, transform_indices = @transform_2, window_bounds = array<i64: 1, 128>}, {pipeline_mode = #tpu.pipeline_mode<synchronous>, transform_indices = @transform_3, window_bounds = array<i64: 128, 128>}, {pipeline_mode = #tpu.pipeline_mode<synchronous>, transform_indices = @transform_4, window_bounds = array<i64: 1, 128>}, {pipeline_mode = #tpu.pipeline_mode<synchronous>, transform_indices = @transform_5, window_bounds = array<i64: 128, 128>}, {pipeline_mode = #tpu.pipeline_mode<synchronous>, transform_indices = @transform_6, window_bounds = array<i64: 1, 128>}, {transform_indices = @transform_7, window_bounds = array<i64: 16, 128>}]} {
    %c0 = arith.constant 0 : index
    %c0_0 = arith.constant 0 : index
    %0 = vector.load %arg1[%c0, %c0_0] : memref<16x16xbf16, #tpu.memory_space<vmem>>, vector<16x16xbf16>
    %c0_1 = arith.constant 0 : index
    %c0_2 = arith.constant 0 : index
    %1 = vector.load %arg2[%c0_1, %c0_2] : memref<16x128xbf16, #tpu.memory_space<vmem>>, vector<16x128xbf16>
    %cst = arith.constant dense<0.000000e+00> : vector<16x128xf32>
    %2 = tpu.matmul %0, %1, %cst {dimension_numbers = #tpu.dot_dimension_numbers<[1], [0], [0], [1], [0, 0, 1, 1], [], []>} : vector<16x16xbf16>, vector<16x128xbf16>, vector<16x128xf32> -> vector<16x128xf32>
    %c0_3 = arith.constant 0 : index
    %c0_4 = arith.constant 0 : index
    %3 = vector.load %arg3[%c0_3, %c0_4] : memref<1x128xf32, #tpu.memory_space<vmem>>, vector<1x128xf32>
    %4 = vector.broadcast %3 : vector<1x128xf32> to vector<16x128xf32>
    %5 = arith.addf %2, %4 : vector<16x128xf32>
    %cst_5 = arith.constant 0.000000e+00 : f32
    %6 = vector.broadcast %cst_5 : f32 to vector<16x128xf32>
    %7 = arith.maximumf %5, %6 : vector<16x128xf32>
    %8 = arith.truncf %7 : vector<16x128xf32> to vector<16x128xbf16>
    %c0_6 = arith.constant 0 : index
    %c0_7 = arith.constant 0 : index
    %9 = vector.load %arg4[%c0_6, %c0_7] : memref<128x128xbf16, #tpu.memory_space<vmem>>, vector<128x128xbf16>
    %cst_8 = arith.constant dense<0.000000e+00> : vector<16x128xf32>
    %10 = tpu.matmul %8, %9, %cst_8 {dimension_numbers = #tpu.dot_dimension_numbers<[1], [0], [0], [1], [0, 0, 1, 1], [], []>} : vector<16x128xbf16>, vector<128x128xbf16>, vector<16x128xf32> -> vector<16x128xf32>
    %c0_9 = arith.constant 0 : index
    %c0_10 = arith.constant 0 : index
    %11 = vector.load %arg5[%c0_9, %c0_10] : memref<1x128xf32, #tpu.memory_space<vmem>>, vector<1x128xf32>
    %12 = vector.broadcast %11 : vector<1x128xf32> to vector<16x128xf32>
    %13 = arith.addf %10, %12 : vector<16x128xf32>
    %cst_11 = arith.constant 0.000000e+00 : f32
    %14 = vector.broadcast %cst_11 : f32 to vector<16x128xf32>
    %15 = arith.maximumf %13, %14 : vector<16x128xf32>
    %16 = arith.truncf %15 : vector<16x128xf32> to vector<16x128xbf16>
    %c0_12 = arith.constant 0 : index
    %c0_13 = arith.constant 0 : index
    %17 = vector.load %arg6[%c0_12, %c0_13] : memref<128x128xbf16, #tpu.memory_space<vmem>>, vector<128x128xbf16>
    %cst_14 = arith.constant dense<0.000000e+00> : vector<16x128xf32>
    %18 = tpu.matmul %16, %17, %cst_14 {dimension_numbers = #tpu.dot_dimension_numbers<[1], [0], [0], [1], [0, 0, 1, 1], [], []>} : vector<16x128xbf16>, vector<128x128xbf16>, vector<16x128xf32> -> vector<16x128xf32>
    %c0_15 = arith.constant 0 : index
    %c0_16 = arith.constant 0 : index
    %19 = vector.load %arg7[%c0_15, %c0_16] : memref<1x128xf32, #tpu.memory_space<vmem>>, vector<1x128xf32>
    %20 = vector.broadcast %19 : vector<1x128xf32> to vector<16x128xf32>
    %21 = arith.addf %18, %20 : vector<16x128xf32>
    %22 = tpu.iota {dimensions = array<i32: 1>} : vector<16x128xi32>
    %c4_i32 = arith.constant 4 : i32
    %23 = vector.broadcast %c4_i32 : i32 to vector<16x128xi32>
    %24 = arith.cmpi sge, %22, %23 : vector<16x128xi32>
    %c8_i32 = arith.constant 8 : i32
    %25 = vector.broadcast %c8_i32 : i32 to vector<16x128xi32>
    %26 = arith.cmpi slt, %22, %25 : vector<16x128xi32>
    %27 = arith.andi %24, %26 : vector<16x128xi1>
    %cst_17 = arith.constant -2.000000e+01 : f32
    %cst_18 = arith.constant 2.000000e+00 : f32
    %28 = vector.broadcast %cst_17 : f32 to vector<16x128xf32>
    %29 = arith.maximumf %28, %21 : vector<16x128xf32>
    %30 = vector.broadcast %cst_18 : f32 to vector<16x128xf32>
    %31 = arith.minimumf %30, %29 : vector<16x128xf32>
    %32 = arith.select %27, %31, %21 : vector<16x128xi1>, vector<16x128xf32>
    %c0_19 = arith.constant 0 : index
    %c0_20 = arith.constant 0 : index
    %33 = vector.load %arg8[%c0_19, %c0_20] : memref<16x128xf32, #tpu.memory_space<vmem>>, vector<16x128xf32>
    tpu.vector_store %arg8[%c0_19, %c0_20], %32 {strides = array<i32>} : memref<16x128xf32, #tpu.memory_space<vmem>>, vector<16x128xf32>,
    return
  }
  func.func @transform_0(%arg0: i32) -> (i32, i32) {
    %c0_i32 = arith.constant 0 : i32
    %c0_i32_0 = arith.constant 0 : i32
    return %arg0, %c0_i32 : i32, i32
  }
  func.func @transform_1(%arg0: i32) -> (i32, i32) {
    %c0_i32 = arith.constant 0 : i32
    %c0_i32_0 = arith.constant 0 : i32
    %c0_i32_1 = arith.constant 0 : i32
    return %c0_i32, %c0_i32_0 : i32, i32
  }
  func.func @transform_2(%arg0: i32) -> (i32, i32) {
    %c0_i32 = arith.constant 0 : i32
    %c0_i32_0 = arith.constant 0 : i32
    %c0_i32_1 = arith.constant 0 : i32
    return %c0_i32, %c0_i32_0 : i32, i32
  }
  func.func @transform_3(%arg0: i32) -> (i32, i32) {
    %c0_i32 = arith.constant 0 : i32
    %c0_i32_0 = arith.constant 0 : i32
    %c0_i32_1 = arith.constant 0 : i32
    return %c0_i32, %c0_i32_0 : i32, i32
  }
  func.func @transform_4(%arg0: i32) -> (i32, i32) {
    %c0_i32 = arith.constant 0 : i32
    %c0_i32_0 = arith.constant 0 : i32
    %c0_i32_1 = arith.constant 0 : i32
    return %c0_i32, %c0_i32_0 : i32, i32
  }
  func.func @transform_5(%arg0: i32) -> (i32, i32) {
    %c0_i32 = arith.constant 0 : i32
    %c0_i32_0 = arith.constant 0 : i32
    %c0_i32_1 = arith.constant 0 : i32
    return %c0_i32, %c0_i32_0 : i32, i32
  }
  func.func @transform_6(%arg0: i32) -> (i32, i32) {
    %c0_i32 = arith.constant 0 : i32
    %c0_i32_0 = arith.constant 0 : i32
    %c0_i32_1 = arith.constant 0 : i32
    return %c0_i32, %c0_i32_0 : i32, i32
  }
  func.func @transform_7(%arg0: i32) -> (i32, i32) {
    %c0_i32 = arith.constant 0 : i32
    %c0_i32_0 = arith.constant 0 : i32
    return %arg0, %c0_i32 : i32, i32
  }
}

</mosaic_0001>

<bundles_post_ra>
// kernel: tpu_custom_call.1
= control target key start
LH: loop header
LB: loop body
LE: loop exit
PB: predicated region body
PF: predicated region fallthrough
CT: control target
= control target key end

     0   :  { %12 = vsyncpa [#allocation3], 0  ;;  %s813_s0 = inlined_call_operand.hbm [shape: bf16[16,16], index: 0, kind: input, shape index: {}]   ;;  %s814_s1 = inlined_call_operand.hbm [shape: bf16[16,128], index: 1, kind: input, shape index: {}]   ;;  %s815_s2 = inlined_call_operand.vmem [shape: f32[1,128], index: 2, kind: input, shape index: {}]   ;;  %s816_s3 = inlined_call_operand.hbm [shape: bf16[128,128], index: 3, kind: input, shape index: {}]   ;;  %s817_s4 = inlined_call_operand.vmem [shape: f32[1,128], index: 4, kind: input, shape index: {}]   ;;  %s818_s5 = inlined_call_operand.hbm [shape: bf16[128,128], index: 5, kind: input, shape index: {}]   ;;  %s819_s6 = inlined_call_operand.vmem [shape: f32[1,128], index: 6, kind: input, shape index: {}]   ;;  %s820_s7 = inlined_call_operand.hbm [shape: f32[16,128], index: 7, kind: output, shape index: {}]  }
   0x1   :  { %13 = vsyncpa [#allocation6], 0 }
   0x2   :  { %14 = vsyncpa [#allocation9], 0 }
   0x3   :  { %15 = vsyncpa [#allocation4], 0  ;;  %s647_s24 = smov [#allocation5]   ;;  %s648_s26 = smov [#allocation2]  }
   0x4   :  { %s33_s25 = sshll.u32 %s647_s24, 4  ;;  %s21_s27 = sshll.u32 %s648_s26, 4  ;;  %s34_s25 = int_to_ptr.vmem [resolvable:$true] %s33_s25  ;;  %s698_s27 = int_to_ptr.vmem [resolvable:$true] %s21_s27 }
   0x5   :  { %s529_s30 = scalar_lea.hbm %s814_s1, 128 }
   0x6   :  { %p530_p0 = scmp.ne.s32.totalorder %s814_s1, %s529_s30  ;;  %p533_p1 = scmp.lt.u32.totalorder %s529_s30, %s814_s1 }
   0x8   :  { %p535_p2 = pnand %p533_p1, %p530_p0 }
   0xa   :  { %538 = shalt.err (!%p535_p2)
}
   0xb   :  { %s539_s12 = scalar_lea.vmem %s34_s25, 128  ;;  %p544_p4 = scmp.lt.s32.totalorder %s34_s25, %s34_s25 }
   0xc   :  { %p540_p3 = scmp.ne.s32.totalorder %s34_s25, %s539_s12  ;;  %p545_p5 = scmp.lt.s32.totalorder %s539_s12, %s539_s12 }
   0xe   :  { %p546_p6 = por %p545_p5, %p544_p4 }
  0x10   :  { %p547_p7 = pnand %p546_p6, %p540_p3 }
  0x12   :  { %550 = shalt.err (!%p547_p7)
}
  0x13   :  { %s649_s13 = smov 64   ;;  %s650_s14 = smov 4  }
  0x14   :  { %39 = dma.hbm_to_vmem [thread:$0]  %s814_s1, 128, %s34_s25, [#allocation6], %s649_s13, %s649_s13, %s650_s14  }
  0x15   :  { %s551_s19 = scalar_lea.hbm %s813_s0, 128 }
  0x16   :  { %p552_p8 = scmp.ne.s32.totalorder %s813_s0, %s551_s19  ;;  %p555_p9 = scmp.lt.u32.totalorder %s551_s19, %s813_s0 }
  0x18   :  { %p557_p10 = pnand %p555_p9, %p552_p8 }
  0x1a   :  { %560 = shalt.err (!%p557_p10)
}
  0x1b   :  { %s561_s24 = scalar_lea.vmem %s698_s27, 128  ;;  %p566_p12 = scmp.lt.s32.totalorder %s698_s27, %s698_s27 }
  0x1c   :  { %p562_p11 = scmp.ne.s32.totalorder %s698_s27, %s561_s24  ;;  %p567_p13 = scmp.lt.s32.totalorder %s561_s24, %s561_s24 }
  0x1e   :  { %p568_p0 = por %p567_p13, %p566_p12 }
  0x20   :  { %p569_p1 = pnand %p568_p0, %p562_p11 }
  0x22   :  { %572 = shalt.err (!%p569_p1)
}
  0x23   :  { %27 = dma.hbm_to_vmem [thread:$0]  %s813_s0, 128, %s698_s27, [#allocation3], %s649_s13, %s649_s13, %s650_s14  }
  0x24   :  { %s651_s26 = smov [#allocation7]   ;;  %s652_s29 = smov [#allocation8]  }
  0x25   :  { %s47_s28 = sshll.u32 %s651_s26, 4  ;;  %s61_s30 = sshll.u32 %s652_s29, 4  ;;  %s48_s28 = int_to_ptr.vmem [resolvable:$true] %s47_s28  ;;  %s735_s30 = int_to_ptr.vmem [resolvable:$true] %s61_s30 }
  0x26   :  { %s573_s10 = scalar_lea.hbm %s816_s3, 1024 }
  0x27   :  { %p574_p2 = scmp.ne.s32.totalorder %s816_s3, %s573_s10  ;;  %p577_p3 = scmp.lt.u32.totalorder %s573_s10, %s816_s3 }
  0x29   :  { %p579_p4 = pnand %p577_p3, %p574_p2 }
  0x2b   :  { %582 = shalt.err (!%p579_p4)
}
  0x2c   :  { %s583_s0 = scalar_lea.vmem %s48_s28, 1024  ;;  %p588_p6 = scmp.lt.s32.totalorder %s48_s28, %s48_s28 }
  0x2d   :  { %p584_p5 = scmp.ne.s32.totalorder %s48_s28, %s583_s0  ;;  %p589_p7 = scmp.lt.s32.totalorder %s583_s0, %s583_s0 }
  0x2f   :  { %p590_p8 = por %p589_p7, %p588_p6 }
  0x31   :  { %p591_p9 = pnand %p590_p8, %p584_p5 }
  0x33   :  { %594 = shalt.err (!%p591_p9)
}
  0x34   :  { %53 = dma.hbm_to_vmem [thread:$0]  %s816_s3, 1024, %s48_s28, [#allocation6], %s649_s13, %s649_s13, %s650_s14  }
  0x35   :  { %s595_s20 = scalar_lea.hbm %s818_s5, 1024 }
  0x36   :  { %p596_p10 = scmp.ne.s32.totalorder %s818_s5, %s595_s20  ;;  %p599_p11 = scmp.lt.u32.totalorder %s595_s20, %s818_s5 }
  0x38   :  { %p601_p12 = pnand %p599_p11, %p596_p10 }
  0x3a   :  { %604 = shalt.err (!%p601_p12)
}
  0x3b   :  { %s605_s1 = scalar_lea.vmem %s735_s30, 1024  ;;  %p610_p0 = scmp.lt.s32.totalorder %s735_s30, %s735_s30 }
  0x3c   :  { %p606_p13 = scmp.ne.s32.totalorder %s735_s30, %s605_s1  ;;  %p611_p1 = scmp.lt.s32.totalorder %s605_s1, %s605_s1 }
  0x3e   :  { %p612_p2 = por %p611_p1, %p610_p0 }
  0x40   :  { %p613_p3 = pnand %p612_p2, %p606_p13 }
  0x42   :  { %616 = shalt.err (!%p613_p3)
}
  0x43   :  { %67 = dma.hbm_to_vmem [thread:$0]  %s818_s5, 1024, %s735_s30, [#allocation9], %s649_s13, %s649_s13, %s650_s14  }
  0x44   :  { %639 = dma.done.wait [#allocation3], 128  }
  0x45   :  { %640 = vsyncadd [#allocation3], 4294967168 }
  0x46   :  { %641 = dma.done.wait [#allocation6], 1152  }
  0x47   :  { %642 = vsyncadd [#allocation6], 4294966144 }
  0x48   :  { %643 = dma.done.wait [#allocation9], 1024  }
  0x49   :  { %644 = vsyncadd [#allocation9], 4294966272  ;;  %v653_v0 = vmov 0.0   ;;  %vm654_vm0 = vmmov 0   ;;  %v511_v1 = vld [vmem:[#allocation5] sm:$0xff]   ;;  %v512_v2 = vld [vmem:[#allocation2] sm:$0xff]   ;;  %v380_v39 = vlaneseq }
  0x4a   :  { %454 = vmatprep.subr.bf16.mxu0 %v653_v0  ;;  %456 = vmatprep.mubr.msk.bf16.mxu0 %vm654_vm0, %v653_v0  ;;  %vm105_vm1 = vcmask 130048   ;;  %v513_v3 = vld [vmem:[#allocation7] sm:$0xff]   ;;  %v514_v4 = vld [vmem:[#allocation7 + $0x8] sm:$0xff]   ;;  %v515_v5 = vld [vmem:[#allocation7 + $0x10] sm:$0xff]  }
  0x4b   :  { %460 = vmatprep.subr.bf16.mxu1 %v653_v0  ;;  %476 = vmatprep.mubr.msk.bf16.mxu1 %vm654_vm0, %v653_v0  ;;  %v516_v6 = vld [vmem:[#allocation7 + $0x18] sm:$0xff]   ;;  %v517_v7 = vld [vmem:[#allocation7 + $0x20] sm:$0xff]   ;;  %v518_v8 = vld [vmem:[#allocation7 + $0x28] sm:$0xff]   ;;  %v381_v40 = vand.u32 127, %v380_v39 }
  0x4c   :  { %455 = vmatpush3.bf16.msra.mxu0 %v511_v1  ;;  %461 = vmatpush3.bf16.msra.mxu1 %v513_v3  ;;  %v519_v9 = vld [vmem:[#allocation7 + $0x30] sm:$0xff]   ;;  %v520_v10 = vld [vmem:[#allocation7 + $0x38] sm:$0xff]   ;;  %v521_v11 = vld [vmem:[#allocation8] sm:$0xff]  }
  0x4d   :  { %480 = vmatprep.subr.bf16.mxu0 %v653_v0  ;;  %462 = vmatprep.subr.bf16.mxu1 %v653_v0  ;;  %v522_v12 = vld [vmem:[#allocation8 + $0x8] sm:$0xff]   ;;  %v523_v13 = vld [vmem:[#allocation8 + $0x10] sm:$0xff]   ;;  %v524_v14 = vld [vmem:[#allocation8 + $0x18] sm:$0xff]   ;;  %vm382_vm2 = vcmp.ge.s32.totalorder %v381_v40, 4  ;;  %vm383_vm3 = vcmp.lt.s32.totalorder %v381_v40, 8 }
  0x4e   :  { %v525_v15 = vld [vmem:[#allocation8 + $0x20] sm:$0xff]   ;;  %v526_v16 = vld [vmem:[#allocation8 + $0x28] sm:$0xff]   ;;  %v412_v17 = vld [vmem:[%s815_s2] ss:$0 sm:$0xff] }
  0x4f   :  { %457 = vmatmul.mubr.msk.bf16.vlgmr.msra.gmra.mrb[0].mxu0 %vm105_vm1, %v512_v2  ;;  %v527_v27 = vld [vmem:[#allocation8 + $0x30] sm:$0xff]   ;;  %v528_v28 = vld [vmem:[#allocation8 + $0x38] sm:$0xff]   ;;  %vm384_vm4 = vmand %vm382_vm2, %vm383_vm3 }
  0x50   :  { %496 = vmatprep.mubr.msk.bf16.mxu0 %vm654_vm0, %v653_v0  ;;  %463 = vmatpush3.bf16.msra.mxu1 %v514_v4  ;;  %v416_v29 = vld [vmem:[%s817_s4] ss:$0 sm:$0xff]  ;;  %s655_s4 = smov [#allocation10]  }
  0x51   :  { %464 = vmatprep.subr.bf16.mxu1 %v653_v0  ;;  %481 = vmatpush3.bf16.msra.mxu0 %v521_v11  ;;  %v425_v41 = vld [vmem:[%s819_s6] ss:$0 sm:$0xff]  ;;  %s398_s29 = sshll.u32 %s655_s4, 4  ;;  %s399_s29 = int_to_ptr.vmem [resolvable:$true] %s398_s29 }
  0x52   :  { %482 = vmatprep.subr.bf16.mxu0 %v653_v0  ;;  %s617_s6 = scalar_lea.vmem %s399_s29, 256  ;;  %p622_p5 = scmp.lt.s32.totalorder %s399_s29, %s399_s29 }
  0x53   :  { %p618_p4 = scmp.ne.s32.totalorder %s399_s29, %s617_s6  ;;  %p623_p6 = scmp.lt.s32.totalorder %s617_s6, %s617_s6 }
  0x54   :  { %465 = vmatpush3.bf16.msra.mxu1 %v515_v5 }
  0x55   :  { %466 = vmatprep.subr.bf16.mxu1 %v653_v0  ;;  %483 = vmatpush3.bf16.msra.mxu0 %v522_v12  ;;  %p624_p7 = por %p623_p6, %p622_p5 }
  0x56   :  { %484 = vmatprep.subr.bf16.mxu0 %v653_v0 }
  0x57   :  { %p625_p8 = pnand %p624_p7, %p618_p4 }
  0x58   :  { %467 = vmatpush3.bf16.msra.mxu1 %v516_v6 }
  0x59   :  { %468 = vmatprep.subr.bf16.mxu1 %v653_v0  ;;  %485 = vmatpush3.bf16.msra.mxu0 %v523_v13 }
  0x5a   :  { %486 = vmatprep.subr.bf16.mxu0 %v653_v0 }
  0x5c   :  { %469 = vmatpush3.bf16.msra.mxu1 %v517_v7 }
  0x5d   :  { %470 = vmatprep.subr.bf16.mxu1 %v653_v0  ;;  %487 = vmatpush3.bf16.msra.mxu0 %v524_v14 }
  0x5e   :  { %488 = vmatprep.subr.bf16.mxu0 %v653_v0 }
  0x60   :  { %471 = vmatpush3.bf16.msra.mxu1 %v518_v8 }
  0x61   :  { %472 = vmatprep.subr.bf16.mxu1 %v653_v0  ;;  %489 = vmatpush3.bf16.msra.mxu0 %v525_v15 }
  0x62   :  { %490 = vmatprep.subr.bf16.mxu0 %v653_v0 }
  0x64   :  { %473 = vmatpush3.bf16.msra.mxu1 %v519_v9 }
  0x65   :  { %474 = vmatprep.subr.bf16.mxu1 %v653_v0  ;;  %491 = vmatpush3.bf16.msra.mxu0 %v526_v16 }
  0x66   :  { %492 = vmatprep.subr.bf16.mxu0 %v653_v0 }
  0x68   :  { %475 = vmatpush3.bf16.msra.mxu1 %v520_v10 }
  0x69   :  { %493 = vmatpush3.bf16.msra.mxu0 %v527_v27 }
  0x6a   :  { %494 = vmatprep.subr.bf16.mxu0 %v653_v0 }
  0x6d   :  { %495 = vmatpush3.bf16.msra.mxu0 %v528_v28 }
 0x122   :  { %v143_v18 = vpop.f32.mrb[0].mxu0 }
 0x123   :  { %v144_v19 = vadd.f32 %v412_v17, %v143_v18  ;;  %v458_v20 = vpop.f32.mrb[1].mxu0 }
 0x124   :  { %v146_v21 = vpop.f32.mrb[2].mxu0 }
 0x125   :  { %v147_v22 = vadd.f32 %v412_v17, %v146_v21  ;;  %v459_v23 = vpop.f32.mrb[3].mxu0  ;;  %v150_v24 = vmax.f32 %v144_v19, 0.0 }
 0x127   :  { %v151_v25 = vmax.f32 %v147_v22, 0.0 }
 0x129   :  { %v152_v26 = vpack.c.bf16 %v151_v25, %v150_v24 }
 0x12b   :  { %477 = vmatmul.mubr.bf16.vlgmr.msra.gmra.mrb[0].mxu1 %v152_v26 }
 0x1fe   :  { %v258_v30 = vpop.f32.mrb[0].mxu1 }
 0x1ff   :  { %v259_v31 = vadd.f32 %v416_v29, %v258_v30  ;;  %v478_v32 = vpop.f32.mrb[1].mxu1 }
 0x200   :  { %v261_v33 = vpop.f32.mrb[2].mxu1 }
 0x201   :  { %v262_v34 = vadd.f32 %v416_v29, %v261_v33  ;;  %v479_v35 = vpop.f32.mrb[3].mxu1  ;;  %v265_v36 = vmax.f32 %v259_v31, 0.0 }
 0x203   :  { %v266_v37 = vmax.f32 %v262_v34, 0.0 }
 0x205   :  { %v267_v38 = vpack.c.bf16 %v266_v37, %v265_v36 }
 0x207   :  { %497 = vmatmul.mubr.bf16.vlgmr.msra.gmra.mrb[4].mxu0 %v267_v38 }
 0x2da   :  { %v373_v42 = vpop.f32.mrb[4].mxu0 }
 0x2db   :  { %v374_v43 = vadd.f32 %v425_v41, %v373_v42  ;;  %v498_v44 = vpop.f32.mrb[5].mxu0 }
 0x2dc   :  { %v376_v45 = vpop.f32.mrb[6].mxu0 }
 0x2dd   :  { %v385_v46 = vmax.f32 %v374_v43, -20.0  ;;  %v377_v47 = vadd.f32 %v425_v41, %v376_v45  ;;  %v499_v48 = vpop.f32.mrb[7].mxu0 }
 0x2df   :  { %v387_v49 = vmin.f32 %v385_v46, 2.0  ;;  %v386_v50 = vmax.f32 %v377_v47, -20.0 }
 0x2e1   :  { %v389_v51 = vsel %vm384_vm4, %v387_v49, %v374_v43  ;;  %v388_v52 = vmin.f32 %v386_v50, 2.0 }
 0x2e2   :  { %391 = vst [vmem:[#allocation10] sm:$0xff] %v389_v51 }
 0x2e3   :  { %v390_v53 = vsel %vm384_vm4, %v388_v52, %v377_v47 }
 0x2e4   :  { %392 = vst [vmem:[#allocation10 + $0x8] sm:$0xff] %v390_v53 }
 0x2e5   :  { %628 = shalt.err (!%p625_p8)
}
 0x2e6   :  { %s629_s9 = scalar_lea.hbm %s820_s7, 256 }
 0x2e7   :  { %p630_p9 = scmp.ne.s32.totalorder %s820_s7, %s629_s9  ;;  %p633_p10 = scmp.lt.u32.totalorder %s629_s9, %s820_s7 }
 0x2e9   :  { %p635_p11 = pnand %p633_p10, %p630_p9 }
 0x2eb   :  { %638 = shalt.err (!%p635_p11)
}
 0x2ec   :  { %s656_s16 = smov 128   ;;  %s657_s0 = smov 8  }
 0x2ed   :  { %404 = dma.vmem_to_hbm [thread:$0]  %s399_s29, 256, %s820_s7, [#allocation4], %s656_s16, %s656_s16, %s657_s0  }
 0x2ee   :  { %645 = dma.done.wait [#allocation4], 256  }
 0x2ef   :  { %646 = vsyncadd [#allocation4], 4294967040 }
 0x2f0   :  { %408 = vsyncpa [#allocation3], 1 }
 0x2f1   :  { %409 = vsyncpa [#allocation6], 1 }
 0x2f2   :  { %410 = vsyncpa [#allocation9], 1 }
 0x2f3   :  { %411 = vsyncpa [#allocation4], 1 }

</bundles_post_ra>
